<compile_context>
chip_gen: v5e
topology: v5e:2x2
jax: 0.10.0
libtpu: 0.0.40
codegen_flags: <defaults>
</compile_context>

<pallas_src>
import functools

import jax
import jax.numpy as jnp
from jax.experimental import pallas as pl
from jax.experimental.pallas import tpu as pltpu

ATOM_FEATS = [7, 5, 4, 4, 2, 2, 4, 3, 8]  # first 8 categorical, last entry = raw feature width


# --------------------------------------------------------------------------------------
# Fused per-graph Pallas kernel: 4 x (ChebConv + LeakyReLU) + residual + concat + max-pool
# --------------------------------------------------------------------------------------
def _cheb_layer(s_bf16, x_f32, w_ref, b_ref, *, k, alpha):
    """One ChebConv layer + LeakyReLU, fully in VMEM/registers.

    s_bf16: [P, P]      bf16 scaled Laplacian block (shared by all layers)
    x_f32 : [P, F_in]   f32 input activations
    w_ref : [K, F_in, H] bf16 Chebyshev weights (per-k accumulated dots, no lane concat)
    b_ref : [1, H]      f32 bias
    """
    # T_0 = x
    h = jnp.dot(x_f32.astype(jnp.bfloat16), w_ref[0], preferred_element_type=jnp.float32)
    if k > 1:
        t_prev = x_f32
        t_cur = jnp.dot(s_bf16, x_f32.astype(jnp.bfloat16),
                        preferred_element_type=jnp.float32)                    # T_1 = S x
        h = h + jnp.dot(t_cur.astype(jnp.bfloat16), w_ref[1],
                        preferred_element_type=jnp.float32)
        for kk in range(2, k):
            t_next = 2.0 * jnp.dot(s_bf16, t_cur.astype(jnp.bfloat16),
                                   preferred_element_type=jnp.float32) - t_prev  # T_k
            h = h + jnp.dot(t_next.astype(jnp.bfloat16), w_ref[kk],
                            preferred_element_type=jnp.float32)
            t_prev, t_cur = t_cur, t_next
    h = h + b_ref[...]
    # LeakyReLU(alpha)
    return jnp.where(h >= 0.0, h, alpha * h)


def chebnet_graph_kernel(s_ref, x_ref, mask_ref,
                         wi_ref, bi_ref,   # init_graph
                         wh_ref, bh_ref,   # head
                         wb_ref, bb_ref,   # body
                         wt_ref, bt_ref,   # tail
                         out_ref, *, k, alpha):
    s = s_ref[0]                   # [P, P] bf16 Laplacian block of this graph
    x = x_ref[0]                   # [P, F_in] f32
    valid = mask_ref[0] > 0.0      # [P, 1] bool (padded node rows are False)

    x0 = _cheb_layer(s, x, wi_ref, bi_ref, k=k, alpha=alpha)   # init_graph
    x1 = _cheb_layer(s, x0, wh_ref, bh_ref, k=k, alpha=alpha)  # head   (dropout: identity)
    x2 = _cheb_layer(s, x1, wb_ref, bb_ref, k=k, alpha=alpha)  # body
    x3 = x0 + x2                                               # residual
    x4 = _cheb_layer(s, x3, wt_ref, bt_ref, k=k, alpha=alpha)  # tail   (dropout: identity)

    # Fused global_max_pool: masked max over (padded) node rows of this graph.
    def pool(v):
        return jnp.max(jnp.where(valid, v, -jnp.inf), axis=0, keepdims=True)   # [1, H]

    # torch.cat((tail, x1, x2, x3), dim=1) -> pooled [1, 4H] lane-dense row.
    out_ref[0] = jnp.concatenate([pool(x4), pool(x1), pool(x2), pool(x3)], axis=1)


def _vmem_limit_bytes():
    """Generation-aware VMEM budget (~80% of physical, capped at 110 MiB)."""
    cap = 128 * 1024 * 1024
    try:
        info = pltpu.get_tpu_info()
        cap = int(getattr(info, "vmem_capacity_bytes", cap))
    except Exception:
        pass
    return min(int(cap * 0.8), 110 * 1024 * 1024)


def _cost_estimate(g, p, f_in, k, hidden):
    # 4 layers: (K-1) S@T products + K T@W products each; advisory only.
    fl_l1 = (k - 1) * 2 * p * p * f_in + k * 2 * p * f_in * hidden
    fl_lh = (k - 1) * 2 * p * p * hidden + k * 2 * p * hidden * hidden
    flops = g * (fl_l1 + 3 * fl_lh)
    bytes_accessed = (g * p * p * 2                                   # S blocks (bf16)
                      + g * p * f_in * 4                              # x blocks (f32)
                      + g * p * 4                                     # masks
                      + (k * f_in * hidden + 3 * k * hidden * hidden) * 2  # weights (bf16)
                      + 4 * hidden * 4                                # biases
                      + g * 4 * hidden * 4)                           # pooled output
    return pl.CostEstimate(flops=flops, transcendentals=0, bytes_accessed=bytes_accessed)


def chebconv_pool(s_blocks, x_blocks, mask_blocks, params, *, alpha):
    """Fused 4-layer ChebConv stack + residual + concat + global max pool. Returns [G, 4H]."""
    g, p, f_in = x_blocks.shape
    k, _, hidden = params["w_init"].shape

    def wcast(w):   # [K, F_in, H] bf16 MXU operand
        return w.astype(jnp.bfloat16)

    def brow(b):
        return b.reshape(1, hidden).astype(jnp.float32)

    args = (
        s_blocks, x_blocks, mask_blocks,
        wcast(params["w_init"]), brow(params["b_init"]),
        wcast(params["w_head"]), brow(params["b_head"]),
        wcast(params["w_body"]), brow(params["b_body"]),
        wcast(params["w_tail"]), brow(params["b_tail"]),
    )

    w1_spec = pl.BlockSpec((k, f_in, hidden), lambda i: (0, 0, 0))
    wh_spec = pl.BlockSpec((k, hidden, hidden), lambda i: (0, 0, 0))
    b_spec = pl.BlockSpec((1, hidden), lambda i: (0, 0))
    in_specs = [
        pl.BlockSpec((1, p, p), lambda i: (i, 0, 0)),       # S block of graph i
        pl.BlockSpec((1, p, f_in), lambda i: (i, 0, 0)),    # node features of graph i
        pl.BlockSpec((1, p, 1), lambda i: (i, 0, 0)),       # valid-node mask of graph i
        w1_spec, b_spec,                                    # init_graph
        wh_spec, b_spec,                                    # head
        wh_spec, b_spec,                                    # body
        wh_spec, b_spec,                                    # tail
    ]
    out_spec = pl.BlockSpec((1, 1, 4 * hidden), lambda i: (i, 0, 0))

    out = pl.pallas_call(
        functools.partial(chebnet_graph_kernel, k=k, alpha=alpha),
        grid=(g,),
        out_shape=jax.ShapeDtypeStruct((g, 1, 4 * hidden), jnp.float32),
        in_specs=in_specs,
        out_specs=out_spec,
        compiler_params=pltpu.CompilerParams(
            dimension_semantics=("parallel",),        # graphs shard across TCs (megacore)
            vmem_limit_bytes=_vmem_limit_bytes(),
        ),
        cost_estimate=_cost_estimate(g, p, f_in, k, hidden),
    )(*args)
    return out.reshape(g, 4 * hidden)


# --------------------------------------------------------------------------------------
# Plain-JAX glue (embedding, per-graph Laplacian blocks, tiny MLP head)
# --------------------------------------------------------------------------------------
def feature_embedding(x_raw):
    """x_raw: [N, 16] -> [N, sum(ATOM_FEATS)=39] (one-hot cats + raw tail)."""
    outs = []
    for i, size in enumerate(ATOM_FEATS[:-1]):
        outs.append(jax.nn.one_hot(x_raw[:, i].astype(jnp.int32), size, dtype=jnp.float32))
    outs.append(x_raw[:, -ATOM_FEATS[-1]:].astype(jnp.float32))
    return jnp.concatenate(outs, axis=1)


def build_graph_blocks(x_emb, edge_index, batch_idx, num_graphs, max_nodes_pad):
    """Per-graph padded blocks: S [G,P,P] bf16, X [G,P,F], mask [G,P,1].

    S = -D^{-1/2} A D^{-1/2} (ChebConv sym norm, lambda_max=2), built per graph so memory
    is sum n_g^2 instead of N^2 and S goes straight to bf16 (no full f32 [N,N]).
    NOTE: for static graphs these blocks can be precomputed/cached across forward calls.
    Assumes batch_idx is sorted (contiguous graphs) and edges stay within a graph.
    """
    n, f_in = x_emb.shape
    counts = jnp.zeros((num_graphs,), jnp.int32).at[batch_idx].add(1)
    offsets = jnp.concatenate([jnp.zeros((1,), jnp.int32), jnp.cumsum(counts)[:-1]])
    local = jnp.arange(n, dtype=jnp.int32) - offsets[batch_idx]

    row, col = edge_index[0], edge_index[1]
    eg = batch_idx[row]          # graph id of each edge
    lr = local[row]
    lc = local[col]

    a = jnp.zeros((num_graphs, max_nodes_pad, max_nodes_pad), jnp.float32)
    a = a.at[eg, lc, lr].add(1.0)                 # matches reference .at[col, row].add(1.0)
    deg = a.sum(axis=2)
    dinv = jnp.where(deg > 0, jax.lax.rsqrt(jnp.maximum(deg, 1e-12)), 0.0)
    s_blocks = (-(dinv[:, :, None] * a * dinv[:, None, :])).astype(jnp.bfloat16)

    x_blocks = jnp.zeros((num_graphs, max_nodes_pad, f_in), jnp.float32)
    x_blocks = x_blocks.at[batch_idx, local, :].set(x_emb)
    mask_blocks = jnp.zeros((num_graphs, max_nodes_pad, 1), jnp.float32)
    mask_blocks = mask_blocks.at[batch_idx, local, 0].set(1.0)
    return s_blocks, x_blocks, mask_blocks


def chebnet_forward(params, x_raw, edge_index, batch_idx, num_graphs, max_nodes,
                    *, alpha=0.01, eps=1e-5):
    x_emb = feature_embedding(x_raw)                              # [N, 39]
    p = ((max_nodes + 7) // 8) * 8                                # pad node dim to sublane mult
    s_b, x_b, m_b = build_graph_blocks(x_emb, edge_index, batch_idx, num_graphs, p)

    # One fused kernel: 4 ChebConv layers + residual + concat + global_max_pool -> [G, 4H].
    # NOTE: empty graphs would yield -inf rows; demo graphs are non-empty.
    pooled = chebconv_pool(s_b, x_b, m_b, params, alpha=alpha)

    # MLP head: Linear -> BatchNorm1d(eval, running stats) -> ReLU -> Linear.  Left to XLA:
    # a few kFLOPs, a dedicated pallas_call would be pure launch overhead.
    h = pooled @ params["mlp_w1"] + params["mlp_b1"]
    h = params["bn_gamma"] * (h - params["bn_mean"]) * jax.lax.rsqrt(params["bn_var"] + eps) \
        + params["bn_beta"]
    h = jnp.maximum(h, 0.0)
    out = h @ params["mlp_w2"] + params["mlp_b2"]                 # [G, 1]
    return out.squeeze(1)                                         # [G]


# --------------------------------------------------------------------------------------
# Deterministic parameter init
# --------------------------------------------------------------------------------------
def init_params(key, k, hidden):
    f_in = sum(ATOM_FEATS)
    keys = jax.random.split(key, 8)

    def w(key_, shape, scale=0.1):
        return jax.random.normal(key_, shape, jnp.float32) * scale

    return {
        "w_init": w(keys[0], (k, f_in, hidden)),
        "b_init": jnp.zeros((hidden,), jnp.float32),
        "w_head": w(keys[1], (k, hidden, hidden)),
        "b_head": jnp.zeros((hidden,), jnp.float32),
        "w_body": w(keys[2], (k, hidden, hidden)),
        "b_body": jnp.zeros((hidden,), jnp.float32),
        "w_tail": w(keys[3], (k, hidden, hidden)),
        "b_tail": jnp.zeros((hidden,), jnp.float32),
        "mlp_w1": w(keys[4], (4 * hidden, hidden)),
        "mlp_b1": jnp.zeros((hidden,), jnp.float32),
        "bn_gamma": jnp.ones((hidden,), jnp.float32),
        "bn_beta": jnp.zeros((hidden,), jnp.float32),
        "bn_mean": jnp.zeros((hidden,), jnp.float32),   # BatchNorm1d running_mean (eval)
        "bn_var": jnp.ones((hidden,), jnp.float32),     # BatchNorm1d running_var  (eval)
        "mlp_w2": w(keys[5], (hidden, 1)),
        "mlp_b2": jnp.zeros((1,), jnp.float32),
    }


# --------------------------------------------------------------------------------------
# Main
# --------------------------------------------------------------------------------------
if __name__ == "__main__":
    K = 3
    HIDDEN = 32
    NODES_PER_GRAPH = 8
    NUM_GRAPHS = 2
    N = NODES_PER_GRAPH * NUM_GRAPHS

    key = jax.random.PRNGKey(0)
    k_cat, k_cont, k_params = jax.random.split(key, 3)

    # Node features: 8 categorical columns (indices within atom_feats ranges) + 8 continuous.
    cat_cols = []
    cat_keys = jax.random.split(k_cat, 8)
    for i, size in enumerate(ATOM_FEATS[:-1]):
        cat_cols.append(jax.random.randint(cat_keys[i], (N, 1), 0, size).astype(jnp.float32))
    cont = jax.random.normal(k_cont, (N, ATOM_FEATS[-1]), jnp.float32)
    x_raw = jnp.concatenate(cat_cols + [cont], axis=1)                  # [16, 16]

    # Two ring graphs of 8 nodes each, undirected (both directions present).
    src_list, dst_list = [], []
    for g in range(NUM_GRAPHS):
        base = g * NODES_PER_GRAPH
        for i in range(NODES_PER_GRAPH):
            a_, b_ = base + i, base + (i + 1) % NODES_PER_GRAPH
            src_list += [a_, b_]
            dst_list += [b_, a_]
    edge_index = jnp.array([src_list, dst_list], dtype=jnp.int32)        # [2, 32]
    batch_idx = jnp.repeat(jnp.arange(NUM_GRAPHS, dtype=jnp.int32), NODES_PER_GRAPH)  # [16]

    params = init_params(k_params, K, HIDDEN)

    out = chebnet_forward(params, x_raw, edge_index, batch_idx, NUM_GRAPHS,
                          NODES_PER_GRAPH, alpha=0.01)
    out = jax.block_until_ready(out)
    assert out.shape == (NUM_GRAPHS,), out.shape
    assert bool(jnp.all(jnp.isfinite(out))), out
    print("KERNEL_OK")
</pallas_src>

<mosaic_0001>
module attributes {stable_mosaic.version = 11 : i64} {
  func.func @chebnet_graph_kernel(%arg0: i32, %arg1: memref<1x8x8xbf16, #tpu.memory_space<vmem>>, %arg2: memref<1x8x39xf32, #tpu.memory_space<vmem>>, %arg3: memref<1x8x1xf32, #tpu.memory_space<vmem>>, %arg4: memref<3x39x32xbf16, #tpu.memory_space<vmem>>, %arg5: memref<1x32xf32, #tpu.memory_space<vmem>>, %arg6: memref<3x32x32xbf16, #tpu.memory_space<vmem>>, %arg7: memref<1x32xf32, #tpu.memory_space<vmem>>, %arg8: memref<3x32x32xbf16, #tpu.memory_space<vmem>>, %arg9: memref<1x32xf32, #tpu.memory_space<vmem>>, %arg10: memref<3x32x32xbf16, #tpu.memory_space<vmem>>, %arg11: memref<1x32xf32, #tpu.memory_space<vmem>>, %arg12: memref<1x1x128xf32, #tpu.memory_space<vmem>>) attributes {dimension_semantics = [#tpu.dimension_semantics<parallel>], iteration_bounds = array<i64: 2>, scalar_prefetch = 0 : i64, scratch_operands = 0 : i64, tpu.core_type = #tpu.core_type<tc>, window_params = [{transform_indices = @transform_0, window_bounds = array<i64: 1, 8, 8>}, {transform_indices = @transform_1, window_bounds = array<i64: 1, 8, 39>}, {transform_indices = @transform_2, window_bounds = array<i64: 1, 8, 1>}, {pipeline_mode = #tpu.pipeline_mode<synchronous>, transform_indices = @transform_3, window_bounds = array<i64: 3, 39, 32>}, {pipeline_mode = #tpu.pipeline_mode<synchronous>, transform_indices = @transform_4, window_bounds = array<i64: 1, 32>}, {pipeline_mode = #tpu.pipeline_mode<synchronous>, transform_indices = @transform_5, window_bounds = array<i64: 3, 32, 32>}, {pipeline_mode = #tpu.pipeline_mode<synchronous>, transform_indices = @transform_6, window_bounds = array<i64: 1, 32>}, {pipeline_mode = #tpu.pipeline_mode<synchronous>, transform_indices = @transform_7, window_bounds = array<i64: 3, 32, 32>}, {pipeline_mode = #tpu.pipeline_mode<synchronous>, transform_indices = @transform_8, window_bounds = array<i64: 1, 32>}, {pipeline_mode = #tpu.pipeline_mode<synchronous>, transform_indices = @transform_9, window_bounds = array<i64: 3, 32, 32>}, {pipeline_mode = #tpu.pipeline_mode<synchronous>, transform_indices = @transform_10, window_bounds = array<i64: 1, 32>}, {transform_indices = @transform_11, window_bounds = array<i64: 1, 1, 128>}]} {
    %c0 = arith.constant 0 : index
    %c0_0 = arith.constant 0 : index
    %c0_1 = arith.constant 0 : index
    %0 = vector.load %arg1[%c0, %c0_0, %c0_1] : memref<1x8x8xbf16, #tpu.memory_space<vmem>>, vector<1x8x8xbf16>
    %1 = vector.shape_cast %0 : vector<1x8x8xbf16> to vector<8x8xbf16>
    %c0_2 = arith.constant 0 : index
    %c0_3 = arith.constant 0 : index
    %c0_4 = arith.constant 0 : index
    %2 = vector.load %arg2[%c0_2, %c0_3, %c0_4] : memref<1x8x39xf32, #tpu.memory_space<vmem>>, vector<1x8x39xf32>
    %3 = vector.shape_cast %2 : vector<1x8x39xf32> to vector<8x39xf32>
    %c0_5 = arith.constant 0 : index
    %c0_6 = arith.constant 0 : index
    %c0_7 = arith.constant 0 : index
    %4 = vector.load %arg3[%c0_5, %c0_6, %c0_7] : memref<1x8x1xf32, #tpu.memory_space<vmem>>, vector<1x8x1xf32>
    %5 = vector.shape_cast %4 : vector<1x8x1xf32> to vector<8x1xf32>
    %cst = arith.constant 0.000000e+00 : f32
    %6 = vector.broadcast %cst : f32 to vector<8x1xf32>
    %7 = arith.cmpf ogt, %5, %6 : vector<8x1xf32>
    %8 = arith.truncf %3 : vector<8x39xf32> to vector<8x39xbf16>
    %c0_8 = arith.constant 0 : index
    %c0_9 = arith.constant 0 : index
    %c0_10 = arith.constant 0 : index
    %9 = vector.load %arg4[%c0_8, %c0_9, %c0_10] : memref<3x39x32xbf16, #tpu.memory_space<vmem>>, vector<1x39x32xbf16>
    %10 = vector.shape_cast %9 : vector<1x39x32xbf16> to vector<39x32xbf16>
    %cst_11 = arith.constant dense<0.000000e+00> : vector<8x32xf32>
    %11 = tpu.matmul %8, %10, %cst_11 {dimension_numbers = #tpu.dot_dimension_numbers<[1], [0], [0], [1], [0, 0, 1, 1], [], []>} : vector<8x39xbf16>, vector<39x32xbf16>, vector<8x32xf32> -> vector<8x32xf32>
    %12 = arith.truncf %3 : vector<8x39xf32> to vector<8x39xbf16>
    %cst_12 = arith.constant dense<0.000000e+00> : vector<8x39xf32>
    %13 = tpu.matmul %1, %12, %cst_12 {dimension_numbers = #tpu.dot_dimension_numbers<[1], [0], [0], [1], [0, 0, 1, 1], [], []>} : vector<8x8xbf16>, vector<8x39xbf16>, vector<8x39xf32> -> vector<8x39xf32>
    %14 = arith.truncf %13 : vector<8x39xf32> to vector<8x39xbf16>
    %c1 = arith.constant 1 : index
    %c0_13 = arith.constant 0 : index
    %c0_14 = arith.constant 0 : index
    %15 = vector.load %arg4[%c1, %c0_13, %c0_14] : memref<3x39x32xbf16, #tpu.memory_space<vmem>>, vector<1x39x32xbf16>
    %16 = vector.shape_cast %15 : vector<1x39x32xbf16> to vector<39x32xbf16>
    %cst_15 = arith.constant dense<0.000000e+00> : vector<8x32xf32>
    %17 = tpu.matmul %14, %16, %cst_15 {dimension_numbers = #tpu.dot_dimension_numbers<[1], [0], [0], [1], [0, 0, 1, 1], [], []>} : vector<8x39xbf16>, vector<39x32xbf16>, vector<8x32xf32> -> vector<8x32xf32>
    %18 = arith.addf %11, %17 : vector<8x32xf32>
    %19 = arith.truncf %13 : vector<8x39xf32> to vector<8x39xbf16>
    %cst_16 = arith.constant dense<0.000000e+00> : vector<8x39xf32>
    %20 = tpu.matmul %1, %19, %cst_16 {dimension_numbers = #tpu.dot_dimension_numbers<[1], [0], [0], [1], [0, 0, 1, 1], [], []>} : vector<8x8xbf16>, vector<8x39xbf16>, vector<8x39xf32> -> vector<8x39xf32>
    %cst_17 = arith.constant 2.000000e+00 : f32
    %21 = vector.broadcast %cst_17 : f32 to vector<8x39xf32>
    %22 = arith.mulf %21, %20 : vector<8x39xf32>
    %23 = arith.subf %22, %3 : vector<8x39xf32>
    %24 = arith.truncf %23 : vector<8x39xf32> to vector<8x39xbf16>
    %c2 = arith.constant 2 : index
    %c0_18 = arith.constant 0 : index
    %c0_19 = arith.constant 0 : index
    %25 = vector.load %arg4[%c2, %c0_18, %c0_19] : memref<3x39x32xbf16, #tpu.memory_space<vmem>>, vector<1x39x32xbf16>
    %26 = vector.shape_cast %25 : vector<1x39x32xbf16> to vector<39x32xbf16>
    %cst_20 = arith.constant dense<0.000000e+00> : vector<8x32xf32>
    %27 = tpu.matmul %24, %26, %cst_20 {dimension_numbers = #tpu.dot_dimension_numbers<[1], [0], [0], [1], [0, 0, 1, 1], [], []>} : vector<8x39xbf16>, vector<39x32xbf16>, vector<8x32xf32> -> vector<8x32xf32>
    %28 = arith.addf %18, %27 : vector<8x32xf32>
    %c0_21 = arith.constant 0 : index
    %c0_22 = arith.constant 0 : index
    %29 = vector.load %arg5[%c0_21, %c0_22] : memref<1x32xf32, #tpu.memory_space<vmem>>, vector<1x32xf32>
    %30 = vector.broadcast %29 : vector<1x32xf32> to vector<8x32xf32>
    %31 = arith.addf %28, %30 : vector<8x32xf32>
    %cst_23 = arith.constant 0.000000e+00 : f32
    %32 = vector.broadcast %cst_23 : f32 to vector<8x32xf32>
    %33 = arith.cmpf oge, %31, %32 : vector<8x32xf32>
    %cst_24 = arith.constant 0.00999999977 : f32
    %34 = vector.broadcast %cst_24 : f32 to vector<8x32xf32>
    %35 = arith.mulf %34, %31 : vector<8x32xf32>
    %36 = arith.select %33, %31, %35 : vector<8x32xi1>, vector<8x32xf32>
    %37 = arith.truncf %36 : vector<8x32xf32> to vector<8x32xbf16>
    %c0_25 = arith.constant 0 : index
    %c0_26 = arith.constant 0 : index
    %c0_27 = arith.constant 0 : index
    %38 = vector.load %arg6[%c0_25, %c0_26, %c0_27] : memref<3x32x32xbf16, #tpu.memory_space<vmem>>, vector<1x32x32xbf16>
    %39 = vector.shape_cast %38 : vector<1x32x32xbf16> to vector<32x32xbf16>
    %cst_28 = arith.constant dense<0.000000e+00> : vector<8x32xf32>
    %40 = tpu.matmul %37, %39, %cst_28 {dimension_numbers = #tpu.dot_dimension_numbers<[1], [0], [0], [1], [0, 0, 1, 1], [], []>} : vector<8x32xbf16>, vector<32x32xbf16>, vector<8x32xf32> -> vector<8x32xf32>
    %41 = arith.truncf %36 : vector<8x32xf32> to vector<8x32xbf16>
    %cst_29 = arith.constant dense<0.000000e+00> : vector<8x32xf32>
    %42 = tpu.matmul %1, %41, %cst_29 {dimension_numbers = #tpu.dot_dimension_numbers<[1], [0], [0], [1], [0, 0, 1, 1], [], []>} : vector<8x8xbf16>, vector<8x32xbf16>, vector<8x32xf32> -> vector<8x32xf32>
    %43 = arith.truncf %42 : vector<8x32xf32> to vector<8x32xbf16>
    %c1_30 = arith.constant 1 : index
    %c0_31 = arith.constant 0 : index
    %c0_32 = arith.constant 0 : index
    %44 = vector.load %arg6[%c1_30, %c0_31, %c0_32] : memref<3x32x32xbf16, #tpu.memory_space<vmem>>, vector<1x32x32xbf16>
    %45 = vector.shape_cast %44 : vector<1x32x32xbf16> to vector<32x32xbf16>
    %cst_33 = arith.constant dense<0.000000e+00> : vector<8x32xf32>
    %46 = tpu.matmul %43, %45, %cst_33 {dimension_numbers = #tpu.dot_dimension_numbers<[1], [0], [0], [1], [0, 0, 1, 1], [], []>} : vector<8x32xbf16>, vector<32x32xbf16>, vector<8x32xf32> -> vector<8x32xf32>
    %47 = arith.addf %40, %46 : vector<8x32xf32>
    %48 = arith.truncf %42 : vector<8x32xf32> to vector<8x32xbf16>
    %cst_34 = arith.constant dense<0.000000e+00> : vector<8x32xf32>
    %49 = tpu.matmul %1, %48, %cst_34 {dimension_numbers = #tpu.dot_dimension_numbers<[1], [0], [0], [1], [0, 0, 1, 1], [], []>} : vector<8x8xbf16>, vector<8x32xbf16>, vector<8x32xf32> -> vector<8x32xf32>
    %cst_35 = arith.constant 2.000000e+00 : f32
    %50 = vector.broadcast %cst_35 : f32 to vector<8x32xf32>
    %51 = arith.mulf %50, %49 : vector<8x32xf32>
    %52 = arith.subf %51, %36 : vector<8x32xf32>
    %53 = arith.truncf %52 : vector<8x32xf32> to vector<8x32xbf16>
    %c2_36 = arith.constant 2 : index
    %c0_37 = arith.constant 0 : index
    %c0_38 = arith.constant 0 : index
    %54 = vector.load %arg6[%c2_36, %c0_37, %c0_38] : memref<3x32x32xbf16, #tpu.memory_space<vmem>>, vector<1x32x32xbf16>
    %55 = vector.shape_cast %54 : vector<1x32x32xbf16> to vector<32x32xbf16>
    %cst_39 = arith.constant dense<0.000000e+00> : vector<8x32xf32>
    %56 = tpu.matmul %53, %55, %cst_39 {dimension_numbers = #tpu.dot_dimension_numbers<[1], [0], [0], [1], [0, 0, 1, 1], [], []>} : vector<8x32xbf16>, vector<32x32xbf16>, vector<8x32xf32> -> vector<8x32xf32>
    %57 = arith.addf %47, %56 : vector<8x32xf32>
    %c0_40 = arith.constant 0 : index
    %c0_41 = arith.constant 0 : index
    %58 = vector.load %arg7[%c0_40, %c0_41] : memref<1x32xf32, #tpu.memory_space<vmem>>, vector<1x32xf32>
    %59 = vector.broadcast %58 : vector<1x32xf32> to vector<8x32xf32>
    %60 = arith.addf %57, %59 : vector<8x32xf32>
    %cst_42 = arith.constant 0.000000e+00 : f32
    %61 = vector.broadcast %cst_42 : f32 to vector<8x32xf32>
    %62 = arith.cmpf oge, %60, %61 : vector<8x32xf32>
    %cst_43 = arith.constant 0.00999999977 : f32
    %63 = vector.broadcast %cst_43 : f32 to vector<8x32xf32>
    %64 = arith.mulf %63, %60 : vector<8x32xf32>
    %65 = arith.select %62, %60, %64 : vector<8x32xi1>, vector<8x32xf32>
    %66 = arith.truncf %65 : vector<8x32xf32> to vector<8x32xbf16>
    %c0_44 = arith.constant 0 : index
    %c0_45 = arith.constant 0 : index
    %c0_46 = arith.constant 0 : index
    %67 = vector.load %arg8[%c0_44, %c0_45, %c0_46] : memref<3x32x32xbf16, #tpu.memory_space<vmem>>, vector<1x32x32xbf16>
    %68 = vector.shape_cast %67 : vector<1x32x32xbf16> to vector<32x32xbf16>
    %cst_47 = arith.constant dense<0.000000e+00> : vector<8x32xf32>
    %69 = tpu.matmul %66, %68, %cst_47 {dimension_numbers = #tpu.dot_dimension_numbers<[1], [0], [0], [1], [0, 0, 1, 1], [], []>} : vector<8x32xbf16>, vector<32x32xbf16>, vector<8x32xf32> -> vector<8x32xf32>
    %70 = arith.truncf %65 : vector<8x32xf32> to vector<8x32xbf16>
    %cst_48 = arith.constant dense<0.000000e+00> : vector<8x32xf32>
    %71 = tpu.matmul %1, %70, %cst_48 {dimension_numbers = #tpu.dot_dimension_numbers<[1], [0], [0], [1], [0, 0, 1, 1], [], []>} : vector<8x8xbf16>, vector<8x32xbf16>, vector<8x32xf32> -> vector<8x32xf32>
    %72 = arith.truncf %71 : vector<8x32xf32> to vector<8x32xbf16>
    %c1_49 = arith.constant 1 : index
    %c0_50 = arith.constant 0 : index
    %c0_51 = arith.constant 0 : index
    %73 = vector.load %arg8[%c1_49, %c0_50, %c0_51] : memref<3x32x32xbf16, #tpu.memory_space<vmem>>, vector<1x32x32xbf16>
    %74 = vector.shape_cast %73 : vector<1x32x32xbf16> to vector<32x32xbf16>
    %cst_52 = arith.constant dense<0.000000e+00> : vector<8x32xf32>
    %75 = tpu.matmul %72, %74, %cst_52 {dimension_numbers = #tpu.dot_dimension_numbers<[1], [0], [0], [1], [0, 0, 1, 1], [], []>} : vector<8x32xbf16>, vector<32x32xbf16>, vector<8x32xf32> -> vector<8x32xf32>
    %76 = arith.addf %69, %75 : vector<8x32xf32>
    %77 = arith.truncf %71 : vector<8x32xf32> to vector<8x32xbf16>
    %cst_53 = arith.constant dense<0.000000e+00> : vector<8x32xf32>
    %78 = tpu.matmul %1, %77, %cst_53 {dimension_numbers = #tpu.dot_dimension_numbers<[1], [0], [0], [1], [0, 0, 1, 1], [], []>} : vector<8x8xbf16>, vector<8x32xbf16>, vector<8x32xf32> -> vector<8x32xf32>
    %cst_54 = arith.constant 2.000000e+00 : f32
    %79 = vector.broadcast %cst_54 : f32 to vector<8x32xf32>
    %80 = arith.mulf %79, %78 : vector<8x32xf32>
    %81 = arith.subf %80, %65 : vector<8x32xf32>
    %82 = arith.truncf %81 : vector<8x32xf32> to vector<8x32xbf16>
    %c2_55 = arith.constant 2 : index
    %c0_56 = arith.constant 0 : index
    %c0_57 = arith.constant 0 : index
    %83 = vector.load %arg8[%c2_55, %c0_56, %c0_57] : memref<3x32x32xbf16, #tpu.memory_space<vmem>>, vector<1x32x32xbf16>
    %84 = vector.shape_cast %83 : vector<1x32x32xbf16> to vector<32x32xbf16>
    %cst_58 = arith.constant dense<0.000000e+00> : vector<8x32xf32>
    %85 = tpu.matmul %82, %84, %cst_58 {dimension_numbers = #tpu.dot_dimension_numbers<[1], [0], [0], [1], [0, 0, 1, 1], [], []>} : vector<8x32xbf16>, vector<32x32xbf16>, vector<8x32xf32> -> vector<8x32xf32>
    %86 = arith.addf %76, %85 : vector<8x32xf32>
    %c0_59 = arith.constant 0 : index
    %c0_60 = arith.constant 0 : index
    %87 = vector.load %arg9[%c0_59, %c0_60] : memref<1x32xf32, #tpu.memory_space<vmem>>, vector<1x32xf32>
    %88 = vector.broadcast %87 : vector<1x32xf32> to vector<8x32xf32>
    %89 = arith.addf %86, %88 : vector<8x32xf32>
    %cst_61 = arith.constant 0.000000e+00 : f32
    %90 = vector.broadcast %cst_61 : f32 to vector<8x32xf32>
    %91 = arith.cmpf oge, %89, %90 : vector<8x32xf32>
    %cst_62 = arith.constant 0.00999999977 : f32
    %92 = vector.broadcast %cst_62 : f32 to vector<8x32xf32>
    %93 = arith.mulf %92, %89 : vector<8x32xf32>
    %94 = arith.select %91, %89, %93 : vector<8x32xi1>, vector<8x32xf32>
    %95 = arith.addf %36, %94 : vector<8x32xf32>
    %96 = arith.truncf %95 : vector<8x32xf32> to vector<8x32xbf16>
    %c0_63 = arith.constant 0 : index
    %c0_64 = arith.constant 0 : index
    %c0_65 = arith.constant 0 : index
    %97 = vector.load %arg10[%c0_63, %c0_64, %c0_65] : memref<3x32x32xbf16, #tpu.memory_space<vmem>>, vector<1x32x32xbf16>
    %98 = vector.shape_cast %97 : vector<1x32x32xbf16> to vector<32x32xbf16>
    %cst_66 = arith.constant dense<0.000000e+00> : vector<8x32xf32>
    %99 = tpu.matmul %96, %98, %cst_66 {dimension_numbers = #tpu.dot_dimension_numbers<[1], [0], [0], [1], [0, 0, 1, 1], [], []>} : vector<8x32xbf16>, vector<32x32xbf16>, vector<8x32xf32> -> vector<8x32xf32>
    %100 = arith.truncf %95 : vector<8x32xf32> to vector<8x32xbf16>
    %cst_67 = arith.constant dense<0.000000e+00> : vector<8x32xf32>
    %101 = tpu.matmul %1, %100, %cst_67 {dimension_numbers = #tpu.dot_dimension_numbers<[1], [0], [0], [1], [0, 0, 1, 1], [], []>} : vector<8x8xbf16>, vector<8x32xbf16>, vector<8x32xf32> -> vector<8x32xf32>
    %102 = arith.truncf %101 : vector<8x32xf32> to vector<8x32xbf16>
    %c1_68 = arith.constant 1 : index
    %c0_69 = arith.constant 0 : index
    %c0_70 = arith.constant 0 : index
    %103 = vector.load %arg10[%c1_68, %c0_69, %c0_70] : memref<3x32x32xbf16, #tpu.memory_space<vmem>>, vector<1x32x32xbf16>
    %104 = vector.shape_cast %103 : vector<1x32x32xbf16> to vector<32x32xbf16>
    %cst_71 = arith.constant dense<0.000000e+00> : vector<8x32xf32>
    %105 = tpu.matmul %102, %104, %cst_71 {dimension_numbers = #tpu.dot_dimension_numbers<[1], [0], [0], [1], [0, 0, 1, 1], [], []>} : vector<8x32xbf16>, vector<32x32xbf16>, vector<8x32xf32> -> vector<8x32xf32>
    %106 = arith.addf %99, %105 : vector<8x32xf32>
    %107 = arith.truncf %101 : vector<8x32xf32> to vector<8x32xbf16>
    %cst_72 = arith.constant dense<0.000000e+00> : vector<8x32xf32>
    %108 = tpu.matmul %1, %107, %cst_72 {dimension_numbers = #tpu.dot_dimension_numbers<[1], [0], [0], [1], [0, 0, 1, 1], [], []>} : vector<8x8xbf16>, vector<8x32xbf16>, vector<8x32xf32> -> vector<8x32xf32>
    %cst_73 = arith.constant 2.000000e+00 : f32
    %109 = vector.broadcast %cst_73 : f32 to vector<8x32xf32>
    %110 = arith.mulf %109, %108 : vector<8x32xf32>
    %111 = arith.subf %110, %95 : vector<8x32xf32>
    %112 = arith.truncf %111 : vector<8x32xf32> to vector<8x32xbf16>
    %c2_74 = arith.constant 2 : index
    %c0_75 = arith.constant 0 : index
    %c0_76 = arith.constant 0 : index
    %113 = vector.load %arg10[%c2_74, %c0_75, %c0_76] : memref<3x32x32xbf16, #tpu.memory_space<vmem>>, vector<1x32x32xbf16>
    %114 = vector.shape_cast %113 : vector<1x32x32xbf16> to vector<32x32xbf16>
    %cst_77 = arith.constant dense<0.000000e+00> : vector<8x32xf32>
    %115 = tpu.matmul %112, %114, %cst_77 {dimension_numbers = #tpu.dot_dimension_numbers<[1], [0], [0], [1], [0, 0, 1, 1], [], []>} : vector<8x32xbf16>, vector<32x32xbf16>, vector<8x32xf32> -> vector<8x32xf32>
    %116 = arith.addf %106, %115 : vector<8x32xf32>
    %c0_78 = arith.constant 0 : index
    %c0_79 = arith.constant 0 : index
    %117 = vector.load %arg11[%c0_78, %c0_79] : memref<1x32xf32, #tpu.memory_space<vmem>>, vector<1x32xf32>
    %118 = vector.broadcast %117 : vector<1x32xf32> to vector<8x32xf32>
    %119 = arith.addf %116, %118 : vector<8x32xf32>
    %cst_80 = arith.constant 0.000000e+00 : f32
    %120 = vector.broadcast %cst_80 : f32 to vector<8x32xf32>
    %121 = arith.cmpf oge, %119, %120 : vector<8x32xf32>
    %cst_81 = arith.constant 0.00999999977 : f32
    %122 = vector.broadcast %cst_81 : f32 to vector<8x32xf32>
    %123 = arith.mulf %122, %119 : vector<8x32xf32>
    %124 = arith.select %121, %119, %123 : vector<8x32xi1>, vector<8x32xf32>
    %cst_82 = arith.constant 0xFF800000 : f32
    %125 = vector.shape_cast %7 : vector<8x1xi1> to vector<8x1xi1>
    %126 = vector.broadcast %125 : vector<8x1xi1> to vector<8x32xi1>
    %127 = vector.broadcast %cst_82 : f32 to vector<8x32xf32>
    %128 = arith.select %126, %124, %127 : vector<8x32xi1>, vector<8x32xf32>
    %cst_83 = arith.constant dense<0xFF800000> : vector<32xf32>
    %129 = vector.multi_reduction <maximumf>, %128, %cst_83 [0] : vector<8x32xf32> to vector<32xf32>
    %130 = vector.shape_cast %129 : vector<32xf32> to vector<1x32xf32>
    %cst_84 = arith.constant 0xFF800000 : f32
    %131 = vector.shape_cast %7 : vector<8x1xi1> to vector<8x1xi1>
    %132 = vector.broadcast %131 : vector<8x1xi1> to vector<8x32xi1>
    %133 = vector.broadcast %cst_84 : f32 to vector<8x32xf32>
    %134 = arith.select %132, %65, %133 : vector<8x32xi1>, vector<8x32xf32>
    %cst_85 = arith.constant dense<0xFF800000> : vector<32xf32>
    %135 = vector.multi_reduction <maximumf>, %134, %cst_85 [0] : vector<8x32xf32> to vector<32xf32>
    %136 = vector.shape_cast %135 : vector<32xf32> to vector<1x32xf32>
    %cst_86 = arith.constant 0xFF800000 : f32
    %137 = vector.shape_cast %7 : vector<8x1xi1> to vector<8x1xi1>
    %138 = vector.broadcast %137 : vector<8x1xi1> to vector<8x32xi1>
    %139 = vector.broadcast %cst_86 : f32 to vector<8x32xf32>
    %140 = arith.select %138, %94, %139 : vector<8x32xi1>, vector<8x32xf32>
    %cst_87 = arith.constant dense<0xFF800000> : vector<32xf32>
    %141 = vector.multi_reduction <maximumf>, %140, %cst_87 [0] : vector<8x32xf32> to vector<32xf32>
    %142 = vector.shape_cast %141 : vector<32xf32> to vector<1x32xf32>
    %cst_88 = arith.constant 0xFF800000 : f32
    %143 = vector.shape_cast %7 : vector<8x1xi1> to vector<8x1xi1>
    %144 = vector.broadcast %143 : vector<8x1xi1> to vector<8x32xi1>
    %145 = vector.broadcast %cst_88 : f32 to vector<8x32xf32>
    %146 = arith.select %144, %95, %145 : vector<8x32xi1>, vector<8x32xf32>
    %cst_89 = arith.constant dense<0xFF800000> : vector<32xf32>
    %147 = vector.multi_reduction <maximumf>, %146, %cst_89 [0] : vector<8x32xf32> to vector<32xf32>
    %148 = vector.shape_cast %147 : vector<32xf32> to vector<1x32xf32>
    %149 = tpu.concatenate %130, %136, %142, %148 in 1 : vector<1x32xf32>, vector<1x32xf32>, vector<1x32xf32>, vector<1x32xf32> -> vector<1x128xf32>
    %c0_90 = arith.constant 0 : index
    %c0_91 = arith.constant 0 : index
    %c0_92 = arith.constant 0 : index
    %150 = vector.load %arg12[%c0_90, %c0_91, %c0_92] : memref<1x1x128xf32, #tpu.memory_space<vmem>>, vector<1x1x128xf32>
    %151 = vector.shape_cast %150 : vector<1x1x128xf32> to vector<1x128xf32>
    %152 = vector.shape_cast %149 : vector<1x128xf32> to vector<1x1x128xf32>
    tpu.vector_store %arg12[%c0_90, %c0_91, %c0_92], %152 {strides = array<i32>} : memref<1x1x128xf32, #tpu.memory_space<vmem>>, vector<1x1x128xf32>,
    return
  }
  func.func @transform_0(%arg0: i32) -> (i32, i32, i32) {
    %c0_i32 = arith.constant 0 : i32
    %c0_i32_0 = arith.constant 0 : i32
    %c0_i32_1 = arith.constant 0 : i32
    return %arg0, %c0_i32, %c0_i32_0 : i32, i32, i32
  }
  func.func @transform_1(%arg0: i32) -> (i32, i32, i32) {
    %c0_i32 = arith.constant 0 : i32
    %c0_i32_0 = arith.constant 0 : i32
    %c0_i32_1 = arith.constant 0 : i32
    return %arg0, %c0_i32, %c0_i32_0 : i32, i32, i32
  }
  func.func @transform_2(%arg0: i32) -> (i32, i32, i32) {
    %c0_i32 = arith.constant 0 : i32
    %c0_i32_0 = arith.constant 0 : i32
    %c0_i32_1 = arith.constant 0 : i32
    return %arg0, %c0_i32, %c0_i32_0 : i32, i32, i32
  }
  func.func @transform_3(%arg0: i32) -> (i32, i32, i32) {
    %c0_i32 = arith.constant 0 : i32
    %c0_i32_0 = arith.constant 0 : i32
    %c0_i32_1 = arith.constant 0 : i32
    %c0_i32_2 = arith.constant 0 : i32
    return %c0_i32, %c0_i32_0, %c0_i32_1 : i32, i32, i32
  }
  func.func @transform_4(%arg0: i32) -> (i32, i32) {
    %c0_i32 = arith.constant 0 : i32
    %c0_i32_0 = arith.constant 0 : i32
    %c0_i32_1 = arith.constant 0 : i32
    return %c0_i32, %c0_i32_0 : i32, i32
  }
  func.func @transform_5(%arg0: i32) -> (i32, i32, i32) {
    %c0_i32 = arith.constant 0 : i32
    %c0_i32_0 = arith.constant 0 : i32
    %c0_i32_1 = arith.constant 0 : i32
    %c0_i32_2 = arith.constant 0 : i32
    return %c0_i32, %c0_i32_0, %c0_i32_1 : i32, i32, i32
  }
  func.func @transform_6(%arg0: i32) -> (i32, i32) {
    %c0_i32 = arith.constant 0 : i32
    %c0_i32_0 = arith.constant 0 : i32
    %c0_i32_1 = arith.constant 0 : i32
    return %c0_i32, %c0_i32_0 : i32, i32
  }
  func.func @transform_7(%arg0: i32) -> (i32, i32, i32) {
    %c0_i32 = arith.constant 0 : i32
    %c0_i32_0 = arith.constant 0 : i32
    %c0_i32_1 = arith.constant 0 : i32
    %c0_i32_2 = arith.constant 0 : i32
    return %c0_i32, %c0_i32_0, %c0_i32_1 : i32, i32, i32
  }
  func.func @transform_8(%arg0: i32) -> (i32, i32) {
    %c0_i32 = arith.constant 0 : i32
    %c0_i32_0 = arith.constant 0 : i32
    %c0_i32_1 = arith.constant 0 : i32
    return %c0_i32, %c0_i32_0 : i32, i32
  }
  func.func @transform_9(%arg0: i32) -> (i32, i32, i32) {
    %c0_i32 = arith.constant 0 : i32
    %c0_i32_0 = arith.constant 0 : i32
    %c0_i32_1 = arith.constant 0 : i32
    %c0_i32_2 = arith.constant 0 : i32
    return %c0_i32, %c0_i32_0, %c0_i32_1 : i32, i32, i32
  }
  func.func @transform_10(%arg0: i32) -> (i32, i32) {
    %c0_i32 = arith.constant 0 : i32
    %c0_i32_0 = arith.constant 0 : i32
    %c0_i32_1 = arith.constant 0 : i32
    return %c0_i32, %c0_i32_0 : i32, i32
  }
  func.func @transform_11(%arg0: i32) -> (i32, i32, i32) {
    %c0_i32 = arith.constant 0 : i32
    %c0_i32_0 = arith.constant 0 : i32
    %c0_i32_1 = arith.constant 0 : i32
    return %arg0, %c0_i32, %c0_i32_0 : i32, i32, i32
  }
}

</mosaic_0001>

<bundles_post_ra>
// kernel: tpu_custom_call.1
= control target key start
LH: loop header
LB: loop body
LE: loop exit
PB: predicated region body
PF: predicated region fallthrough
CT: control target
= control target key end

     0   :  { %s1846_s0 = inlined_call_operand.vmem [shape: bf16[2,8,8], index: 0, kind: input, shape index: {}]   ;;  %s1847_s1 = inlined_call_operand.vmem [shape: f32[2,8,39], index: 1, kind: input, shape index: {}]   ;;  %s1848_s2 = inlined_call_operand.vmem [shape: f32[2,8,1], index: 2, kind: input, shape index: {}]   ;;  %s1849_s3 = inlined_call_operand.vmem [shape: bf16[3,39,32], index: 3, kind: input, shape index: {}]   ;;  %s1850_s4 = inlined_call_operand.vmem [shape: f32[1,32], index: 4, kind: input, shape index: {}]   ;;  %s1851_s5 = inlined_call_operand.vmem [shape: bf16[3,32,32], index: 5, kind: input, shape index: {}]   ;;  %s1852_s6 = inlined_call_operand.vmem [shape: f32[1,32], index: 6, kind: input, shape index: {}]   ;;  %s1853_s7 = inlined_call_operand.vmem [shape: bf16[3,32,32], index: 7, kind: input, shape index: {}]   ;;  %s1854_s8 = inlined_call_operand.vmem [shape: f32[1,32], index: 8, kind: input, shape index: {}]   ;;  %s1855_s9 = inlined_call_operand.hbm [shape: bf16[3,32,32], index: 9, kind: input, shape index: {}]   ;;  %s1856_s10 = inlined_call_operand.vmem [shape: f32[1,32], index: 10, kind: input, shape index: {}]   ;;  %s1857_s11 = inlined_call_operand.hbm [shape: f32[2,1,128], index: 11, kind: output, shape index: {}]  }
   0x1   :  { %1859 = sst [smem:[#allocation10_spill]] %s1855_s9 }
   0x2   :  { %16 = vsyncpa [#allocation3], 0 }
   0x3   :  { %17 = vsyncpa [#allocation4], 0 }
   0x4   :  { %19 = vsyncpa [#allocation4 + $0x1], 0  ;;  %s1601_s17 = smov 0   ;;  %s1603_s18 = smov 0  }
   0x5   :  { %s1605_s19 = smov 0   ;;  %s1607_s20 = smov 0  }
   0x6 LB: > { %1860 = sst [smem:[#allocation8_spill]] %s1527_s19  ;;  %s1622_s21 = sadd.s32 4294967295, %s1531_s20   ;;  %s1531_s20 = sphi %s1607_s20, %s1869_s20   ;;  %s1527_s19 = sphi %s1605_s19, %s1866_s19   ;;  %s1523_s18 = sphi %s1603_s18, %s1868_s18   ;;  %s1519_s17 = sphi %s1601_s17, %s1867_s17  }
   0x7   : > { %s1196_s22 = sadd.s32 4294967294, %s1531_s20   ;;  %s1626_s23 = sadd.s32 1, %s1531_s20  }
   0x8   : > { %s278_s24 = sadd.s32 1, %s1527_s19  ;;  %s275_s25 = ssub.s32 %s1531_s20, %s1626_s23 }
   0x9   : > { %p288_p0 = scmp.ne.s32.totalorder %s1527_s19, %s1523_s18  ;;  %p276_p1 = scmp.eq.s32.totalorder %s275_s25, 0 }
   0xa   : > { %p289_p2 = scmp.eq.s32.totalorder %s1622_s21, 1  ;;  %p294_p3 = scmp.ne.s32.totalorder %s1523_s18, %s1519_s17 }
   0xb   : > { %p295_p4 = scmp.eq.s32.totalorder %s1196_s22, 1  ;;  %p1197_p7 = scmp.ge.s32.totalorder %s1531_s20, 1 }
   0xc   : > { %s1637_s26 = scalar_select %p276_p1, %s1527_s19, %s278_s24  }
   0xd   : > { %p1639_p5 = por %p289_p2, %p288_p0  ;;  %p1643_p6 = por %p295_p4, %p294_p3 }
   0xe   : > { %1861 = sst [smem:[#allocation9_spill]] %s1637_s26  ;;  %p302_p8 = scmp.lt.s32.totalorder %s1531_s20, 3 }
   0xf   : > { %p1387_p9 = scmp.eq.s32.totalorder %s1622_s21, 0  ;;  %s1864_s9 = sld [smem:[#allocation10_spill]] }
  0x10   : > { %p303_p10 = pnand %p1197_p7, %p302_p8  ;;  %s1533_s13 = smov [#allocation2]  }
  0x11   : > { %s333_s14 = sshll.u32 %s1533_s13, 4  ;;  %s1534_s15 = smov 64   ;;  %s334_s14 = int_to_ptr.vmem [resolvable:$true] %s333_s14 }
  0x12   : > { %p1379_p11 = pneg %p303_p10  ;;  %s1535_s16 = smov 4  }
  0x13   : > { %373 = sbr.rel (%p303_p10) target bundleno = 1702 (0x6a6), region = 64 }
  0x14   : > { %p1380_p12 = pnand %p1387_p9, %p1379_p11 }
  0x15   : > { %s331_s12 = sshll.u32 %s1864_s9, 4  ;;  %s332_s12 = int_to_ptr.hbm [resolvable:$true] %s331_s12 }
  0x16   : > { %1382 = dma.hbm_to_vmem [thread:$0]  (!%p1380_p12), %s332_s12, 768, %s334_s14, [#allocation3], %s1534_s15, %s1534_s15, %s1535_s16  }
  0x18   : > { %1510 = dma.done.wait (%p1387_p9), [#allocation3], 768  }
  0x19   : > { %1512 = vsyncadd (%p1387_p9), [#allocation3], 4294966528  ;;  %p420_p13 = scmp.lt.s32.totalorder %s1622_s21, 1  ;;  %vm490_vm0 = vcmask 1042432   ;;  %v1536_v0 = vmov 65535   ;;  %vm447_vm1 = vcmask 1043456   ;;  %s1101_s13 = scalar_lea.hbm %s1857_s11, %s1622_s21 }
  0x1a   : > { %v491_v1 = vsel %vm490_vm0, 4294967295, %v1536_v0  ;;  %v442_v3 = vld [vmem:[%s1849_s3 + $0x10] sm:$0xf]  ;;  %v1210_v6 = vld [vmem:[%s1849_s3 + $0x24] sm:$0xf]  ;;  %vm443_vm2 = vcmask 64512  }
  0x1b   : > { %s1661_s22 = scalar_select %p420_p13, %s1622_s21, 1  ;;  %v518_v5 = vunpack.c.l.b16 %v442_v3  ;;  %v492_v7 = vsel %vm447_vm1, %v491_v1, 0  ;;  %v480_v8 = vunpack.c.l.b16 %v1210_v6  ;;  %v1350_v15 = vld [vmem:[%s1849_s3 + $0x8] sm:$0xff]  ;;  %v1352_v16 = vld [vmem:[%s1849_s3 + $0x1c] sm:$0xff]  ;;  %vm486_vm3 = vcmask 318464   ;;  %v1351_v18 = vld [vmem:[%s1849_s3 + $0x14] sm:$0xff] }
  0x1c   : > { %v1349_v17 = vld [vmem:[%s1849_s3] sm:$0xff]  ;;  %v1234_v23 = vld [vmem:[%s1849_s3 + $0x38] sm:$0xf]  ;;  %v1354_v28 = vld [vmem:[%s1849_s3 + $0x30] sm:$0xff]  ;;  %vm648_vm5 = vcmask 261120   ;;  %v1537_v61 = vmov 0  }
  0x1d   : > { %s1203_s24 = sshll.u32 %s1661_s22, 3  ;;  %s1202_s25 = sshll.u32 %s1661_s22, 2  ;;  %v521_v10 = vpack.c.b16 %v518_v5, %v518_v5  ;;  %v483_v12 = vpack.c.b16 %v480_v8, %v480_v8  ;;  %v575_v25 = vunpack.c.l.b16 %v1234_v23  ;;  %v1353_v30 = vld [vmem:[%s1849_s3 + $0x28] sm:$0xff]  ;;  %v1355_v40 = vld [vmem:[%s1851_s5] sm:$0xff]  ;;  %v1358_v41 = vld [vmem:[%s1851_s5 + $0x18] sm:$0xff]  ;;  %1430 = vset.pattern.permute.xlu0 %v1537_v61  ;;  %vm1087_vm11 = vcmask 523264  }
  0x1e   : > { %s427_s12 = scalar_lea.vmem %s1847_s1, %s1203_s24  ;;  %s423_s9 = scalar_lea.vmem %s1846_s0, %s1202_s25  ;;  %v1356_v39 = vld [vmem:[%s1851_s5 + $0x8] sm:$0xff]  ;;  %v1431_v42 = vld [vmem:[%s1850_s4] ss:$0 sm:$0xff]  ;;  %v1357_v51 = vld [vmem:[%s1851_s5 + $0x10] sm:$0xff]  ;;  %vm1089_vm12 = vcmask 785408  }
  0x1f   : > { %v434_v2 = vld [vmem:[%s427_s12] sm:$0xff]  ;;  %v527_v13 = vand.u32 %v521_v10, %v492_v7  ;;  %v494_v14 = vand.u32 %v492_v7, %v483_v12  ;;  %v578_v26 = vpack.c.b16 %v575_v25, %v575_v25  ;;  %v1360_v58 = vld [vmem:[%s1851_s5 + $0x28] sm:$0xff]  ;;  %s431_s14 = scalar_lea.vmem %s1848_s2, %s1203_s24  ;;  %v1364_v8 = vld [vmem:[%s1853_s7 + $0x18] sm:$0xff]  ;;  %s1539_s25 = smov 64  }
  0x20   : > { %v437_v4 = vpack.c.bf16 %v434_v2, %v434_v2  ;;  %v1681_v11 = vld [vmem:[%s423_s9] sm:$0xf]  ;;  %v1362_v6 = vld [vmem:[%s1853_s7 + $0x8] sm:$0xff]  ;;  %s1538_s9 = smov 32   ;;  %s1540_s19 = smov 96  }
  0x21   : > { %534 = vmatpush.bf16.msra.mxu2 %v527_v13  ;;  %501 = vmatpush.bf16.msra.mxu1 %v494_v14  ;;  %v585_v27 = vand.u32 %v578_v26, %v492_v7  ;;  %v1359_v59 = vld [vmem:[%s1851_s5 + $0x20] sm:$0xff]  ;;  %s1105_s15 = sshll.u32 %s1101_s13, 4  ;;  %s1485_s26 = scalar_lea.hbm %s1857_s11, 2  ;;  %s1106_s15 = int_to_ptr.hbm [resolvable:$true] %s1105_s15 }
  0x22   : > { %v449_v9 = vsel %vm447_vm1, %v437_v4, 0  ;;  %v435_v60 = vld [vmem:[%s431_s14] sm:$0xff]  ;;  %s1479_s16 = sshra.s32 %s1106_s15, 4  ;;  %s1480_s16 = int_to_ptr.hbm [resolvable:$true] %s1479_s16 }
  0x23   : > { %458 = vmatpush.bf16.msra.mxu0 %v449_v9  ;;  %vm436_vm6 = vcmp.gt.f32.partialorder %v435_v60, 0.0  ;;  %v1361_v7 = vld [vmem:[%s1853_s7] sm:$0xff]  ;;  %s1481_s21 = scalar_lea.hbm %s1480_s16, 1  ;;  %p1486_p3 = scmp.lt.s32.totalorder %s1480_s16, %s1857_s11 }
  0x24   : > { %v1037_v62 = vsel %vm436_vm6, 1, %v1537_v61  ;;  %v1432_v10 = vld [vmem:[%s1852_s6] ss:$0 sm:$0xff]  ;;  %p1482_p0 = scmp.ne.s32.totalorder %s1480_s16, %s1481_s21  ;;  %p1487_p4 = scmp.lt.s32.totalorder %s1485_s26, %s1481_s21 }
  0x25   : > { %535 = vmatpush.bf16.msra.mxu2 %v1350_v15  ;;  %502 = vmatpush.bf16.msra.mxu1 %v1352_v16 }
  0x26   : > { %1205 = vmatmul.msk.bf16.vlgmr.msra.gmra.mxu0 %vm443_vm2, %v1681_v11  ;;  %1039 = vperm.xlu0 %1430, %v1037_v62   ;;  %p1483_p1 = pnand %p1482_p0, %p1639_p5  ;;  %p1488_p7 = por %p1487_p4, %p1486_p3 }
  0x27   : > { %592 = vmatpush.bf16.msrb.mxu0 %v585_v27 }
  0x28   : > { %p1484_p2 = pneg %p1483_p1 }
  0x29   : > { %536 = vmatpush.bf16.msra.mxu2 %v1349_v17  ;;  %503 = vmatpush.bf16.msra.mxu1 %v1351_v18 }
  0x2a   : > { %p1489_p8 = pnand %p1488_p7, %p1484_p2 }
  0x2b   : > { %593 = vmatpush.bf16.msrb.mxu0 %v1354_v28 }
  0x2c   : > { %1228 = vmatmul.msk.bf16.vlgmr.msra.gmra.mxu2 %vm486_vm3, %v437_v4 }
  0x2d   : > { %685 = vmatpush.bf16.msrb.mxu2 %v1356_v39  ;;  %658 = vmatpush.bf16.msrb.mxu1 %v1358_v41 }
  0x2f   : > { %594 = vmatpush.bf16.msrb.mxu0 %v1353_v30 }
  0x31   : > { %686 = vmatpush.bf16.msrb.mxu2 %v1355_v40  ;;  %659 = vmatpush.bf16.msrb.mxu1 %v1357_v51 }
  0x35   : > { %800 = vmatpush.bf16.msra.mxu2 %v1364_v8 }
  0x98   : > { %v1764_v14 = vpop.permute.xlu0 %1039 }
  0x99   : > { %vm1041_vm8 = vcmp.eq.s32.totalorder %v1764_v14, 1 }
  0xa3   : > { %v460_v19 = vpop.f32.mrf.mxu0 }
  0xa4   : > { %v464_v20 = vpack.c.bf16 %v460_v19, %v460_v19 }
  0xa6   : > { %1219 = vmatmul.msk.bf16.vlgmr.msra.gmra.mxu1 %vm486_vm3, %v464_v20  ;;  %v542_v21 = vsel %vm447_vm1, %v464_v20, 0 }
  0xa7   : > { %551 = vmatpush.bf16.msra.mxu3 %v542_v21 }
  0xaa   : > { %1229 = vmatmul.msk.bf16.vlgmr.msra.gmra.mxu3 %vm443_vm2, %v1681_v11 }
  0xab   : > { %v462_v22 = vpop.f32.mrf.mxu0 }
  0xaf   : > { %v538_v24 = vpop.f32.mrf.mxu2 }
  0xb7   : > { %v540_v29 = vpop.f32.mrf.mxu2 }
  0xb8   : > { %v1363_v29 = vld [vmem:[%s1853_s7 + $0x10] sm:$0xff] }
  0xb9   : > { %801 = vmatpush.bf16.msra.mxu2 %v1363_v29 }
 0x123   : > { %v505_v31 = vpop.f32.mrf.mxu1 }
 0x124   : > { %v539_v32 = vadd.f32 %v538_v24, %v505_v31 }
 0x12b   : > { %v507_v33 = vpop.f32.mrf.mxu1 }
 0x12d   : > { %v553_v34 = vpop.f32.mrf.mxu3 }
 0x12e   : > { %v557_v35 = vmul.f32 2.0, %v553_v34 }
 0x130   : > { %v558_v36 = vsub.f32 %v557_v35, %v434_v2 }
 0x132   : > { %v559_v37 = vpack.c.bf16 %v558_v36, %v558_v36  ;;  %v1366_v36 = vld [vmem:[%s1853_s7 + $0x28] sm:$0xff] }
 0x134   : > { %1243 = vmatmul.msk.bf16.vlgmr.msrb.gmra.mxu0 %vm486_vm3, %v559_v37  ;;  %v1365_v37 = vld [vmem:[%s1853_s7 + $0x20] sm:$0xff] }
 0x135   : > { %v555_v38 = vpop.f32.mrf.mxu3 }
 0x1b1   : > { %v596_v43 = vpop.f32.mrf.mxu0 }
 0x1b2   : > { %v600_v44 = vadd.f32 %v596_v43, %v539_v32 }
 0x1b4   : > { %v605_v45 = vadd.f32 %v1431_v42, %v600_v44 }
 0x1b6   : > { %vm606_vm4 = vcmp.ge.f32.partialorder %v605_v45, 0.0  ;;  %v607_v46 = vmul.f32 0.01, %v605_v45 }
 0x1b8   : > { %v1724_v47 = vsel %vm606_vm4, %v605_v45, %v607_v46  ;;  %v1368_v45 = vld [vmem:[#allocation2 + $0x8] sm:$0xff]  ;;  %v1367_v46 = vld [vmem:[#allocation2] sm:$0xff] }
 0x1b9   : > { %v598_v48 = vpop.f32.mrf.mxu0  ;;  %v609_v49 = vpack.c.bf16 %v1724_v47, %v1724_v47 }
 0x1bb   : > { %1266 = vmatmul.msk.bf16.vlgmr.msrb.gmra.mxu2 %vm648_vm5, %v609_v49  ;;  %v615_v50 = vsel %vm447_vm1, %v609_v49, 0  ;;  %v1433_v49 = vld [vmem:[%s1854_s8] ss:$0 sm:$0xff] }
 0x1bc   : > { %624 = vmatpush.bf16.msrb.mxu3 %v615_v50 }
 0x1bf   : > { %1244 = vmatmul.msk.bf16.vlgmr.msrb.gmra.mxu3 %vm443_vm2, %v1681_v11 }
 0x1c0   : > { %736 = vmatpush.bf16.msra.mxu3 %v1360_v58 }
 0x1c4   : > { %737 = vmatpush.bf16.msra.mxu3 %v1359_v59 }
 0x23e   : > { %v688_v52 = vpop.f32.mrf.mxu2 }
 0x242   : > { %v626_v53 = vpop.f32.mrf.mxu3 }
 0x243   : > { %v630_v54 = vpack.c.bf16 %v626_v53, %v626_v53 }
 0x245   : > { %v692_v55 = vsel %vm447_vm1, %v630_v54, 0  ;;  %1257 = vmatmul.msk.bf16.vlgmr.msrb.gmra.mxu1 %vm648_vm5, %v630_v54 }
 0x246   : > { %v690_v56 = vpop.f32.mrf.mxu2  ;;  %701 = vmatpush.bf16.msra.mxu0 %v692_v55 }
 0x249   : > { %1267 = vmatmul.msk.bf16.vlgmr.msra.gmra.mxu0 %vm443_vm2, %v1681_v11 }
 0x24a   : > { %v628_v57 = vpop.f32.mrf.mxu3  ;;  %827 = vmatpush.bf16.msrb.mxu0 %v1362_v6 }
 0x24e   : > { %828 = vmatpush.bf16.msrb.mxu0 %v1361_v7 }
 0x2c2   : > { %v661_v63 = vpop.f32.mrf.mxu1 }
 0x2c3   : > { %v689_v9 = vadd.f32 %v688_v52, %v661_v63 }
 0x2c6   : > { %v703_v0 = vpop.f32.mrf.mxu0 }
 0x2c7   : > { %v707_v1 = vmul.f32 2.0, %v703_v0 }
 0x2c9   : > { %v708_v2 = vsub.f32 %v707_v1, %v1724_v47 }
 0x2ca   : > { %v663_v3 = vpop.f32.mrf.mxu1 }
 0x2cb   : > { %v709_v4 = vpack.c.bf16 %v708_v2, %v708_v2 }
 0x2cd   : > { %1280 = vmatmul.msk.bf16.vlgmr.msra.gmra.mxu3 %vm648_vm5, %v709_v4 }
 0x2ce   : > { %v705_v5 = vpop.f32.mrf.mxu0 }
 0x350   : > { %v739_v12 = vpop.f32.mrf.mxu3 }
 0x351   : > { %v743_v13 = vadd.f32 %v739_v12, %v689_v9  ;;  %v1369_v12 = vld [vmem:[#allocation2 + $0x10] sm:$0xff] }
 0x353   : > { %v748_v15 = vadd.f32 %v1432_v10, %v743_v13  ;;  %v1370_v10 = vld [vmem:[#allocation2 + $0x18] sm:$0xff] }
 0x354   : > { %943 = vmatpush.bf16.msra.mxu0 %v1370_v10 }
 0x355   : > { %vm749_vm7 = vcmp.ge.f32.partialorder %v748_v15, 0.0  ;;  %v750_v16 = vmul.f32 0.01, %v748_v15 }
 0x357   : > { %v751_v17 = vsel %vm749_vm7, %v748_v15, %v750_v16 }
 0x358   : > { %v752_v18 = vpack.c.bf16 %v751_v17, %v751_v17  ;;  %v1050_v19 = vsel %vm1041_vm8, %v751_v17, -inf  ;;  %v741_v20 = vpop.f32.mrf.mxu3  ;;  %944 = vmatpush.bf16.msra.mxu0 %v1369_v12 }
 0x359   : > { %v1051_v21 = vsel %vm648_vm5, %v1050_v19, -inf  ;;  %v1372_v20 = vld [vmem:[#allocation2 + $0x28] sm:$0xff] }
 0x35a   : > { %v1052_v22 = vrot.slane %v1051_v21, 4  ;;  %1303 = vmatmul.msk.bf16.vlgmr.msrb.gmra.mxu0 %vm648_vm5, %v752_v18  ;;  %v758_v23 = vsel %vm447_vm1, %v752_v18, 0 }
 0x35b   : > { %767 = vmatpush.bf16.msra.mxu1 %v758_v23 }
 0x35c   : > { %v1053_v24 = vmax.f32 %v1051_v21, %v1052_v22  ;;  %v1371_v21 = vld [vmem:[#allocation2 + $0x20] sm:$0xff] }
 0x35e   : > { %1281 = vmatmul.msk.bf16.vlgmr.msra.gmra.mxu1 %vm443_vm2, %v1681_v11  ;;  %v1054_v25 = vrot.slane %v1053_v24, 2 }
 0x35f   : > { %878 = vmatpush.bf16.msrb.mxu1 %v1366_v36 }
 0x360   : > { %v1055_v26 = vmax.f32 %v1053_v24, %v1054_v25 }
 0x362   : > { %v1056_v27 = vrot.slane %v1055_v26, 1 }
 0x363   : > { %879 = vmatpush.bf16.msrb.mxu1 %v1365_v37 }
 0x364   : > { %v1057_v28 = vmax.f32 %v1055_v26, %v1056_v27 }
 0x366   : > { %1075 = vrot.lane.b32.xlu0 %v1057_v28, %s1538_s9  ;;  %s418_s9 = sand.u32 1, %s1523_s18  }
 0x367   : > { %s419_s14 = scalar_lea.vmem [#allocation5], %s418_s9  ;;  %s1093_s24 = scalar_lea.sflag [#allocation4], %s418_s9 }
 0x368   : > { %s1103_s22 = sshll.u32 %s419_s14, 4  ;;  %s1104_s22 = int_to_ptr.vmem [resolvable:$true] %s1103_s22 }
 0x3d7   : > { %v830_v30 = vpop.f32.mrf.mxu0 }
 0x3d8   : > { %v1076_v14 = vpop.permute.xlu0 %1075 }
 0x3db   : > { %v769_v31 = vpop.f32.mrf.mxu1 }
 0x3dc   : > { %v773_v32 = vpack.c.bf16 %v769_v31, %v769_v31 }
 0x3de   : > { %v834_v33 = vsel %vm447_vm1, %v773_v32, 0  ;;  %1294 = vmatmul.msk.bf16.vlgmr.msra.gmra.mxu2 %vm648_vm5, %v773_v32 }
 0x3df   : > { %v832_v34 = vpop.f32.mrf.mxu0  ;;  %843 = vmatpush.bf16.msrb.mxu3 %v834_v33 }
 0x3e2   : > { %1304 = vmatmul.msk.bf16.vlgmr.msrb.gmra.mxu3 %vm443_vm2, %v1681_v11 }
 0x3e3   : > { %v771_v35 = vpop.f32.mrf.mxu1  ;;  %970 = vmatpush.bf16.msra.mxu3 %v1368_v45 }
 0x3e7   : > { %971 = vmatpush.bf16.msra.mxu3 %v1367_v46 }
 0x461   : > { %v803_v38 = vpop.f32.mrf.mxu2 }
 0x462   : > { %v831_v48 = vadd.f32 %v830_v30, %v803_v38 }
 0x465   : > { %v845_v39 = vpop.f32.mrf.mxu3 }
 0x466   : > { %v849_v40 = vmul.f32 2.0, %v845_v39 }
 0x468   : > { %v850_v41 = vsub.f32 %v849_v40, %v751_v17 }
 0x469   : > { %v805_v42 = vpop.f32.mrf.mxu2 }
 0x46a   : > { %v851_v43 = vpack.c.bf16 %v850_v41, %v850_v41 }
 0x46c   : > { %1317 = vmatmul.msk.bf16.vlgmr.msrb.gmra.mxu1 %vm648_vm5, %v851_v43 }
 0x46d   : > { %v847_v44 = vpop.f32.mrf.mxu3 }
 0x4e9   : > { %v881_v50 = vpop.f32.mrf.mxu1 }
 0x4ea   : > { %v885_v51 = vadd.f32 %v881_v50, %v831_v48 }
 0x4ec   : > { %v890_v52 = vadd.f32 %v1433_v49, %v885_v51 }
 0x4ee   : > { %vm891_vm9 = vcmp.ge.f32.partialorder %v890_v52, 0.0  ;;  %v892_v53 = vmul.f32 0.01, %v890_v52 }
 0x4f0   : > { %v893_v54 = vsel %vm891_vm9, %v890_v52, %v892_v53 }
 0x4f1   : > { %v894_v55 = vadd.f32 %v893_v54, %v1724_v47  ;;  %v883_v56 = vpop.f32.mrf.mxu1  ;;  %v1058_v57 = vsel %vm1041_vm8, %v893_v54, -inf }
 0x4f2   : > { %v1059_v58 = vsel %vm648_vm5, %v1058_v57, -inf }
 0x4f3   : > { %v895_v59 = vpack.c.bf16 %v894_v55, %v894_v55  ;;  %v1060_v60 = vrot.slane %v1059_v58, 4  ;;  %v1066_v61 = vsel %vm1041_vm8, %v894_v55, -inf }
 0x4f4   : > { %v1067_v62 = vsel %vm648_vm5, %v1066_v61, -inf }
 0x4f5   : > { %1336 = vmatmul.msk.bf16.vlgmr.msra.gmra.mxu3 %vm648_vm5, %v895_v59  ;;  %v901_v63 = vsel %vm447_vm1, %v895_v59, 0  ;;  %v1061_v0 = vmax.f32 %v1059_v58, %v1060_v60  ;;  %v1068_v1 = vrot.slane %v1067_v62, 4 }
 0x4f6   : > { %910 = vmatpush.bf16.msrb.mxu2 %v901_v63 }
 0x4f7   : > { %v1062_v47 = vrot.slane %v1061_v0, 2  ;;  %v1069_v2 = vmax.f32 %v1067_v62, %v1068_v1 }
 0x4f9   : > { %1318 = vmatmul.msk.bf16.vlgmr.msrb.gmra.mxu2 %vm443_vm2, %v1681_v11  ;;  %v1063_v3 = vmax.f32 %v1061_v0, %v1062_v47  ;;  %v1070_v4 = vrot.slane %v1069_v2, 2 }
 0x4fa   : > { %1021 = vmatpush.bf16.msra.mxu2 %v1372_v20 }
 0x4fb   : > { %v1064_v5 = vrot.slane %v1063_v3, 1  ;;  %v1071_v7 = vmax.f32 %v1069_v2, %v1070_v4 }
 0x4fd   : > { %v1065_v6 = vmax.f32 %v1063_v3, %v1064_v5  ;;  %v1072_v8 = vrot.slane %v1071_v7, 1 }
 0x4fe   : > { %1022 = vmatpush.bf16.msra.mxu2 %v1371_v21 }
 0x4ff   : > { %1079 = vrot.lane.b32.xlu1 %v1065_v6, %s1539_s25  ;;  %v1073_v9 = vmax.f32 %v1071_v7, %v1072_v8 }
 0x507   : > { %1083 = vrot.lane.b32.xlu1 %v1073_v9, %s1540_s19 }
 0x571   : > { %v1080_v40 = vpop.permute.xlu1 %1079 }
 0x578   : > { %v973_v13 = vpop.f32.mrf.mxu3 }
 0x579   : > { %v1084_v46 = vpop.permute.xlu1 %1083 }
 0x57c   : > { %v912_v15 = vpop.f32.mrf.mxu2 }
 0x57d   : > { %v916_v16 = vpack.c.bf16 %v912_v15, %v912_v15 }
 0x57f   : > { %v977_v17 = vsel %vm447_vm1, %v916_v16, 0  ;;  %1327 = vmatmul.msk.bf16.vlgmr.msra.gmra.mxu0 %vm648_vm5, %v916_v16 }
 0x580   : > { %v975_v18 = vpop.f32.mrf.mxu3  ;;  %986 = vmatpush.bf16.msra.mxu1 %v977_v17 }
 0x583   : > { %1337 = vmatmul.msk.bf16.vlgmr.msra.gmra.mxu1 %vm443_vm2, %v1681_v11  ;;  %v1434_v11 = vld [vmem:[%s1856_s10] ss:$0 sm:$0xff] }
 0x584   : > { %v914_v19 = vpop.f32.mrf.mxu2 }
 0x5fc   : > { %v946_v22 = vpop.f32.mrf.mxu0 }
 0x5fd   : > { %v974_v29 = vadd.f32 %v973_v13, %v946_v22 }
 0x600   : > { %v988_v23 = vpop.f32.mrf.mxu1 }
 0x601   : > { %v992_v24 = vmul.f32 2.0, %v988_v23 }
 0x603   : > { %v993_v25 = vsub.f32 %v992_v24, %v894_v55 }
 0x604   : > { %v948_v26 = vpop.f32.mrf.mxu0 }
 0x605   : > { %v994_v27 = vpack.c.bf16 %v993_v25, %v993_v25 }
 0x607   : > { %1346 = vmatmul.msk.bf16.vlgmr.msra.gmra.mxu2 %vm648_vm5, %v994_v27 }
 0x608   : > { %v990_v28 = vpop.f32.mrf.mxu1 }
 0x68a   : > { %v1024_v30 = vpop.f32.mrf.mxu2 }
 0x68b   : > { %v1028_v31 = vadd.f32 %v1024_v30, %v974_v29 }
 0x68d   : > { %v1033_v32 = vadd.f32 %v1434_v11, %v1028_v31 }
 0x68f   : > { %vm1034_vm10 = vcmp.ge.f32.partialorder %v1033_v32, 0.0  ;;  %v1035_v33 = vmul.f32 0.01, %v1033_v32 }
 0x691   : > { %v1036_v34 = vsel %vm1034_vm10, %v1033_v32, %v1035_v33 }
 0x692   : > { %v1042_v35 = vsel %vm1041_vm8, %v1036_v34, -inf  ;;  %v1026_v36 = vpop.f32.mrf.mxu2 }
 0x693   : > { %v1043_v37 = vsel %vm648_vm5, %v1042_v35, -inf }
 0x694   : > { %v1044_v38 = vrot.slane %v1043_v37, 4 }
 0x696   : > { %v1045_v39 = vmax.f32 %v1043_v37, %v1044_v38 }
 0x698   : > { %v1046_v41 = vrot.slane %v1045_v39, 2 }
 0x69a   : > { %v1047_v42 = vmax.f32 %v1045_v39, %v1046_v41 }
 0x69c   : > { %v1048_v43 = vrot.slane %v1047_v42, 1 }
 0x69e   : > { %v1049_v44 = vmax.f32 %v1047_v42, %v1048_v43 }
 0x6a0   : > { %v1086_v45 = vsel %vm648_vm5, %v1049_v44, %v1076_v14 }
 0x6a1   : > { %v1088_v48 = vsel %vm1087_vm11, %v1086_v45, %v1080_v40 }
 0x6a2   : > { %v1090_v49 = vsel %vm1089_vm12, %v1088_v48, %v1084_v46 }
 0x6a3   : > { %1091 = vst [vmem:[%s419_s14] sm:$0x1] %v1090_v49 }
 0x6a4   : > { %1492 = shalt.err (!%p1489_p8)
}
 0x6a5   : > { %1377 = dma.vmem_to_hbm [thread:$0]  (%p1639_p5), %s1104_s22, 16, %s1106_s15, %s1093_s24  }
 0x6a6 PF: > { %p1389_p9 = scmp.ge.s32.totalorder %s1531_s20, 2  ;;  %s1117_s9 = sand.u32 1, %s1519_s17  }
 0x6a7   : > { %s1118_s12 = scalar_lea.sflag [#allocation4], %s1117_s9 }
 0x6a8   : > { %p1384_p10 = pnand %p1389_p9, %p1643_p6 }
 0x6aa   : > { %p1385_p11 = pneg %p1384_p10 }
 0x6ac   : > { %1514 = dma.done.wait (%p1385_p11), %s1118_s12, 16  }
 0x6ad   : > { %1516 = vsyncadd (%p1385_p11), %s1118_s12, 4294967280  ;;  %s1865_s13 = sld [smem:[#allocation8_spill]]  ;;  %p22_p12 = scmp.ge.s32.totalorder %s1626_s23, 4  }
 0x6ae   : > { %s1866_s19 = sld [smem:[#allocation9_spill]]  ;;  %s1867_s17 = smov %s1523_s18 }
 0x6af   : > { %s1869_s20 = smov %s1626_s23  ;;  %24 = sbr.rel (!%p22_p12) target bundleno = 6 (0x6), region = 118 }
 0x6b3   : > { %s1868_s18 = smov %s1865_s13 }
 0x6b4   :  { %1123 = vsyncpa [#allocation3], 1 }
 0x6b5   :  { %1125 = vsyncpa [#allocation3 + $0x1], 1 }
 0x6b6   :  { %1126 = vsyncpa [#allocation4], 1 }
 0x6b7   :  { %1128 = vsyncpa [#allocation4 + $0x1], 1 }

</bundles_post_ra>
